<compile_context>
chip_gen: v7x
topology: tpu7x:2x2x1
jax: 0.10.0
libtpu: 0.0.40
codegen_flags: <defaults>
</compile_context>

<pallas_src>
import functools

import jax
import jax.numpy as jnp
from jax.experimental import pallas as pl
from jax.experimental.pallas import tpu as pltpu

LANES = 128            # f32 lane width
SUB = 128              # strip-mine granule (batch rows per inner sub-tile)
BIAS_LANE = LANES - 1  # "ones lane" used to fold the layer-2 bias into the matmul
NEG_INF = -1e30


def _round_up(x, m):
    return ((x + m - 1) // m) * m


def _cdiv(a, b):
    return -(-a // b)


# --------------------------------------------------------------------------
# Kernel
# --------------------------------------------------------------------------
def _actor_critic_kernel(x_ref, p1_ref, p2t_ref, out_ref):
    obs_dim = x_ref.shape[1]
    n_sub, out_rows, sub = out_ref.shape      # out block: [bm//SUB, 8, SUB]
    lanes = p1_ref.shape[1]

    p1 = p1_ref[...]                          # [obs+1, 128]
    p2t = p2t_ref[...]                        # [out_rows, 128]

    # Hoisted loop invariants (broadcast/iota are not CSE'd by JAX).
    row = jax.lax.broadcasted_iota(jnp.int32, (out_rows, sub), 0)
    is_value_row = row == 0
    bias_row = jnp.broadcast_to(p1[obs_dim:obs_dim + 1, :], (sub, lanes))

    def subtile(s, carry):
        r0 = pl.multiple_of(s * sub, sub)
        x = x_ref[pl.ds(r0, sub), :]                          # [sub, obs_dim]

        # ---- fused layer 1 (critic | actor): obs_dim VPU FMAs -----------
        acc = bias_row                                        # bias (+ ones lane)
        for k in range(obs_dim):                              # static unroll
            acc = acc + x[:, k:k + 1] * p1[k:k + 1, :]
        h = jnp.maximum(acc, 0.0)                             # [sub, 128]; h[:,127]==1

        # ---- fused layer 2: one "NT" MXU matmul -> features x batch ----
        # out_t[f, b] = sum_k p2t[f, k] * h[b, k]
        # (bias via ones lane; padding rows get -1e30 baked in)
        out_t = jax.lax.dot_general(
            p2t, h, (((1,), (1,)), ((), ())),
            preferred_element_type=jnp.float32)               # [out_rows, sub]

        # ---- masked softmax over the logit rows (only row 0 needs masking)
        masked = jnp.where(is_value_row, jnp.float32(NEG_INF), out_t)
        m = jnp.max(masked, axis=0, keepdims=True)
        e = jnp.exp(masked - m)                               # 0 on value/padding rows
        probs = e * pl.reciprocal(jnp.sum(e, axis=0, keepdims=True), approx=False)

        # Packed, lane-dense store: row 0 = value, rows 1..A = probs, rest 0.
        out_ref[s] = jnp.where(is_value_row, out_t, probs)
        return carry

    jax.lax.fori_loop(0, n_sub, subtile, None, unroll=True)


# --------------------------------------------------------------------------
# Parameter packing (done ONCE, outside the hot path)
# --------------------------------------------------------------------------
def pack_params(params, obs_dim, hidden, n_actions):
    """Pack the 8 Linear params into two lane-padded f32 slabs (p1, p2t)."""
    H, A = hidden, n_actions
    out_rows = max(8, _round_up(1 + A, 8))
    assert 2 * H <= BIAS_LANE, "fused hidden (2H) must leave lane 127 free"
    assert 1 + A <= out_rows

    # p1: rows 0..obs-1 = [cw1 | aw1 | 0], row obs = [cb1 | ab1 | 0 ... 1.0]
    w1 = jnp.concatenate([params["cw1"], params["aw1"]], axis=1)   # [obs, 2H]
    b1 = jnp.concatenate([params["cb1"], params["ab1"]], axis=1)   # [1, 2H]
    p1 = jnp.concatenate([w1, b1], axis=0)                         # [obs+1, 2H]
    p1 = jnp.pad(p1, ((0, 0), (0, LANES - 2 * H)))                 # [obs+1, 128]
    p1 = p1.at[obs_dim, BIAS_LANE].set(1.0)                        # ones lane

    # p2t: [out_rows, 128] transposed layer-2 weights.
    #   row 0      : critic head  (weights in lanes [0,H),  bias in lane 127)
    #   rows 1..A  : actor head   (weights in lanes [H,2H), bias in lane 127)
    #   rows 1+A.. : padding rows -> bias lane = -1e30 (baked softmax mask)
    p2t = jnp.zeros((out_rows, LANES), jnp.float32)
    p2t = p2t.at[0, :H].set(params["cw2"][:, 0])
    p2t = p2t.at[0, BIAS_LANE].set(params["cb2"][0, 0])
    p2t = p2t.at[1:1 + A, H:2 * H].set(params["aw2"].T)
    p2t = p2t.at[1:1 + A, BIAS_LANE].set(params["ab2"][0, :])
    p2t = p2t.at[1 + A:, BIAS_LANE].set(jnp.float32(NEG_INF))
    return p1, p2t


# --------------------------------------------------------------------------
# Forward wrapper
# --------------------------------------------------------------------------
@functools.partial(jax.jit, static_argnames=("n_actions", "block_rows"))
def actor_critic_forward(x, p1, p2t, *, n_actions, block_rows=512):
    """x: [B, obs_dim] f32.  Returns (action_probs [B, A], state_values [B, 1])."""
    B, obs_dim = x.shape
    out_rows = p2t.shape[0]
    assert p1.shape == (obs_dim + 1, LANES)
    assert p2t.shape[1] == LANES
    assert block_rows % SUB == 0 and block_rows >= SUB

    # Tile selection: big row blocks (amortize per-grid-step overhead), but keep
    # grid >= 2 whenever there is more than one 128-row sub-tile of real work so
    # the "parallel" batch axis can shard across both v7x TensorCores.
    n_tiles = _cdiv(B, SUB)
    tiles_per_block = max(1, min(block_rows // SUB, n_tiles // 2))
    bm = tiles_per_block * SUB
    Bp = _round_up(B, bm)                       # always a multiple of 128
    if Bp != B:
        x = jnp.pad(x, ((0, Bp - B), (0, 0)))

    out = pl.pallas_call(
        _actor_critic_kernel,
        # Packed output: [n_subtiles, 8, 128] -> 32 B of writeback per state.
        out_shape=jax.ShapeDtypeStruct((Bp // SUB, out_rows, SUB), jnp.float32),
        grid=(Bp // bm,),
        in_specs=[
            pl.BlockSpec((bm, obs_dim), lambda i: (i, 0)),           # x tile
            pl.BlockSpec((obs_dim + 1, LANES), lambda i: (0, 0)),    # packed layer-1
            pl.BlockSpec((out_rows, LANES), lambda i: (0, 0)),       # packed layer-2
        ],
        out_specs=pl.BlockSpec((bm // SUB, out_rows, SUB), lambda i: (i, 0, 0)),
        compiler_params=pltpu.CompilerParams(
            dimension_semantics=("parallel",)),
    )(x, p1, p2t)

    # Cheap unpack, fused in the same jit as the kernel (no second slab pass).
    values = out[:, 0, :].reshape(-1)[:B].reshape(B, 1)
    probs = jnp.swapaxes(out[:, 1:1 + n_actions, :], 1, 2).reshape(-1, n_actions)[:B]
    return probs, values


# --------------------------------------------------------------------------
# Test harness
# --------------------------------------------------------------------------
def init_params(key, obs_dim, hidden, n_actions):
    """Deterministic synthetic parameters (PyTorch-Linear-like uniform init)."""
    ks = jax.random.split(key, 4)

    def lin(k, fan_in, fan_out):
        bound = 1.0 / jnp.sqrt(fan_in)
        kw, kb = jax.random.split(k)
        w = jax.random.uniform(kw, (fan_in, fan_out), jnp.float32, -bound, bound)
        b = jax.random.uniform(kb, (1, fan_out), jnp.float32, -bound, bound)
        return w, b

    cw1, cb1 = lin(ks[0], obs_dim, hidden)
    cw2, cb2 = lin(ks[1], hidden, 1)
    aw1, ab1 = lin(ks[2], obs_dim, hidden)
    aw2, ab2 = lin(ks[3], hidden, n_actions)
    return dict(cw1=cw1, cb1=cb1, cw2=cw2, cb2=cb2,
                aw1=aw1, ab1=ab1, aw2=aw2, ab2=ab2)


def reference_forward(x, p):
    h_c = jnp.maximum(x @ p["cw1"] + p["cb1"], 0.0)
    values = h_c @ p["cw2"] + p["cb2"]
    h_a = jnp.maximum(x @ p["aw1"] + p["ab1"], 0.0)
    logits = h_a @ p["aw2"] + p["ab2"]
    probs = jax.nn.softmax(logits, axis=1)
    return probs, values


if __name__ == "__main__":
    # CartPole-v0: obs_dim=4, n_actions=2; hidden_size=32; batch of 8 states.
    OBS_DIM, HIDDEN, N_ACTIONS, BATCH = 4, 32, 2, 8

    key = jax.random.PRNGKey(0)
    k_params, k_x, k_big = jax.random.split(key, 3)
    params = init_params(k_params, OBS_DIM, HIDDEN, N_ACTIONS)
    p1, p2t = pack_params(params, OBS_DIM, HIDDEN, N_ACTIONS)  # packed once

    # Small batch (single grid step).
    x = jax.random.normal(k_x, (BATCH, OBS_DIM), dtype=jnp.float32)
    probs, values = actor_critic_forward(x, p1, p2t, n_actions=N_ACTIONS)
    jax.block_until_ready((probs, values))

    ref_probs, ref_values = reference_forward(x, params)
    assert probs.shape == (BATCH, N_ACTIONS) and values.shape == (BATCH, 1)
    assert jnp.allclose(probs, ref_probs, atol=1e-5, rtol=1e-5)
    assert jnp.allclose(values, ref_values, atol=1e-5, rtol=1e-5)
    assert jnp.allclose(jnp.sum(probs, axis=1), 1.0, atol=1e-5)

    # Larger batch: exercises padding, multi-sub-tile strip-mining and grid >= 2.
    B_BIG = 1000
    x_big = jax.random.normal(k_big, (B_BIG, OBS_DIM), dtype=jnp.float32)
    probs_b, values_b = actor_critic_forward(x_big, p1, p2t, n_actions=N_ACTIONS)
    jax.block_until_ready((probs_b, values_b))
    ref_probs_b, ref_values_b = reference_forward(x_big, params)
    assert probs_b.shape == (B_BIG, N_ACTIONS) and values_b.shape == (B_BIG, 1)
    assert jnp.allclose(probs_b, ref_probs_b, atol=1e-5, rtol=1e-5)
    assert jnp.allclose(values_b, ref_values_b, atol=1e-5, rtol=1e-5)

    print("KERNEL_OK")
</pallas_src>

<mosaic_0001>
module attributes {stable_mosaic.version = 11 : i64} {
  func.func @_actor_critic_kernel(%arg0: i32, %arg1: memref<128x4xf32, #tpu.memory_space<vmem>>, %arg2: memref<5x128xf32, #tpu.memory_space<vmem>>, %arg3: memref<8x128xf32, #tpu.memory_space<vmem>>, %arg4: memref<1x8x128xf32, #tpu.memory_space<vmem>>) attributes {dimension_semantics = [#tpu.dimension_semantics<parallel>], iteration_bounds = array<i64: 1>, scalar_prefetch = 0 : i64, scratch_operands = 0 : i64, tpu.core_type = #tpu.core_type<tc>, window_params = [{transform_indices = @transform_0, window_bounds = array<i64: 128, 4>}, {pipeline_mode = #tpu.pipeline_mode<synchronous>, transform_indices = @transform_1, window_bounds = array<i64: 5, 128>}, {pipeline_mode = #tpu.pipeline_mode<synchronous>, transform_indices = @transform_2, window_bounds = array<i64: 8, 128>}, {transform_indices = @transform_3, window_bounds = array<i64: 1, 8, 128>}]} {
    %c0 = arith.constant 0 : index
    %c0_0 = arith.constant 0 : index
    %0 = vector.load %arg2[%c0, %c0_0] : memref<5x128xf32, #tpu.memory_space<vmem>>, vector<5x128xf32>
    %c0_1 = arith.constant 0 : index
    %c0_2 = arith.constant 0 : index
    %1 = vector.load %arg3[%c0_1, %c0_2] : memref<8x128xf32, #tpu.memory_space<vmem>>, vector<8x128xf32>
    %2 = tpu.iota {dimensions = array<i32: 0>} : vector<8x128xi32>
    %c0_i32 = arith.constant 0 : i32
    %3 = vector.broadcast %c0_i32 : i32 to vector<8x128xi32>
    %4 = arith.cmpi eq, %2, %3 : vector<8x128xi32>
    %5 = vector.extract_strided_slice %0 {offsets = [4, 0], sizes = [1, 128], strides = [1, 1]} : vector<5x128xf32> to vector<1x128xf32>
    %6 = vector.shape_cast %5 : vector<1x128xf32> to vector<1x128xf32>
    %7 = vector.broadcast %6 : vector<1x128xf32> to vector<128x128xf32>
    %c0_i32_3 = arith.constant 0 : i32
    %c128_i32 = arith.constant 128 : i32
    %8 = arith.muli %c0_i32_3, %c128_i32 : i32
    %9 = tpu.assume_multiple %8, 128 : i32
    %10 = arith.index_cast %9 : i32 to index
    %c0_4 = arith.constant 0 : index
    %11 = vector.load %arg1[%10, %c0_4] : memref<128x4xf32, #tpu.memory_space<vmem>>, vector<128x4xf32>
    %12 = vector.extract_strided_slice %11 {offsets = [0, 0], sizes = [128, 1], strides = [1, 1]} : vector<128x4xf32> to vector<128x1xf32>
    %13 = vector.extract_strided_slice %0 {offsets = [0, 0], sizes = [1, 128], strides = [1, 1]} : vector<5x128xf32> to vector<1x128xf32>
    %14 = vector.broadcast %12 : vector<128x1xf32> to vector<128x128xf32>
    %15 = vector.broadcast %13 : vector<1x128xf32> to vector<128x128xf32>
    %16 = arith.mulf %14, %15 : vector<128x128xf32>
    %17 = arith.addf %7, %16 : vector<128x128xf32>
    %18 = vector.extract_strided_slice %11 {offsets = [0, 1], sizes = [128, 1], strides = [1, 1]} : vector<128x4xf32> to vector<128x1xf32>
    %19 = vector.extract_strided_slice %0 {offsets = [1, 0], sizes = [1, 128], strides = [1, 1]} : vector<5x128xf32> to vector<1x128xf32>
    %20 = vector.broadcast %18 : vector<128x1xf32> to vector<128x128xf32>
    %21 = vector.broadcast %19 : vector<1x128xf32> to vector<128x128xf32>
    %22 = arith.mulf %20, %21 : vector<128x128xf32>
    %23 = arith.addf %17, %22 : vector<128x128xf32>
    %24 = vector.extract_strided_slice %11 {offsets = [0, 2], sizes = [128, 1], strides = [1, 1]} : vector<128x4xf32> to vector<128x1xf32>
    %25 = vector.extract_strided_slice %0 {offsets = [2, 0], sizes = [1, 128], strides = [1, 1]} : vector<5x128xf32> to vector<1x128xf32>
    %26 = vector.broadcast %24 : vector<128x1xf32> to vector<128x128xf32>
    %27 = vector.broadcast %25 : vector<1x128xf32> to vector<128x128xf32>
    %28 = arith.mulf %26, %27 : vector<128x128xf32>
    %29 = arith.addf %23, %28 : vector<128x128xf32>
    %30 = vector.extract_strided_slice %11 {offsets = [0, 3], sizes = [128, 1], strides = [1, 1]} : vector<128x4xf32> to vector<128x1xf32>
    %31 = vector.extract_strided_slice %0 {offsets = [3, 0], sizes = [1, 128], strides = [1, 1]} : vector<5x128xf32> to vector<1x128xf32>
    %32 = vector.broadcast %30 : vector<128x1xf32> to vector<128x128xf32>
    %33 = vector.broadcast %31 : vector<1x128xf32> to vector<128x128xf32>
    %34 = arith.mulf %32, %33 : vector<128x128xf32>
    %35 = arith.addf %29, %34 : vector<128x128xf32>
    %cst = arith.constant 0.000000e+00 : f32
    %36 = vector.broadcast %cst : f32 to vector<128x128xf32>
    %37 = arith.maximumf %35, %36 : vector<128x128xf32>
    %cst_5 = arith.constant dense<0.000000e+00> : vector<8x128xf32>
    %38 = tpu.matmul %1, %37, %cst_5 {dimension_numbers = #tpu.dot_dimension_numbers<[1], [1], [0], [0], [0, 0, 1, 0], [], []>} : vector<8x128xf32>, vector<128x128xf32>, vector<8x128xf32> -> vector<8x128xf32>
    %cst_6 = arith.constant -1.000000e+30 : f32
    %39 = vector.broadcast %cst_6 : f32 to vector<8x128xf32>
    %40 = arith.select %4, %39, %38 : vector<8x128xi1>, vector<8x128xf32>
    %cst_7 = arith.constant dense<0xFF800000> : vector<128xf32>
    %41 = vector.multi_reduction <maximumf>, %40, %cst_7 [0] : vector<8x128xf32> to vector<128xf32>
    %42 = vector.shape_cast %41 : vector<128xf32> to vector<1x128xf32>
    %43 = vector.broadcast %42 : vector<1x128xf32> to vector<8x128xf32>
    %44 = arith.subf %40, %43 : vector<8x128xf32>
    %45 = math.exp %44 : vector<8x128xf32>
    %cst_8 = arith.constant dense<0.000000e+00> : vector<128xf32>
    %46 = vector.multi_reduction <add>, %45, %cst_8 [0] : vector<8x128xf32> to vector<128xf32>
    %47 = vector.shape_cast %46 : vector<128xf32> to vector<1x128xf32>
    %48 = tpu.reciprocal %47 : vector<1x128xf32> -> vector<1x128xf32>
    %49 = vector.broadcast %48 : vector<1x128xf32> to vector<8x128xf32>
    %50 = arith.mulf %45, %49 : vector<8x128xf32>
    %51 = arith.select %4, %38, %50 : vector<8x128xi1>, vector<8x128xf32>
    %52 = arith.index_cast %c0_i32_3 : i32 to index
    %c0_9 = arith.constant 0 : index
    %c0_10 = arith.constant 0 : index
    %53 = vector.load %arg4[%52, %c0_9, %c0_10] : memref<1x8x128xf32, #tpu.memory_space<vmem>>, vector<1x8x128xf32>
    %54 = vector.shape_cast %53 : vector<1x8x128xf32> to vector<8x128xf32>
    %55 = vector.shape_cast %51 : vector<8x128xf32> to vector<1x8x128xf32>
    tpu.vector_store %arg4[%52, %c0_9, %c0_10], %55 {strides = array<i32>} : memref<1x8x128xf32, #tpu.memory_space<vmem>>, vector<1x8x128xf32>,
    %c1_i32 = arith.constant 1 : i32
    return
  }
  func.func @transform_0(%arg0: i32) -> (i32, i32) {
    %c0_i32 = arith.constant 0 : i32
    %c0_i32_0 = arith.constant 0 : i32
    return %arg0, %c0_i32 : i32, i32
  }
  func.func @transform_1(%arg0: i32) -> (i32, i32) {
    %c0_i32 = arith.constant 0 : i32
    %c0_i32_0 = arith.constant 0 : i32
    %c0_i32_1 = arith.constant 0 : i32
    return %c0_i32, %c0_i32_0 : i32, i32
  }
  func.func @transform_2(%arg0: i32) -> (i32, i32) {
    %c0_i32 = arith.constant 0 : i32
    %c0_i32_0 = arith.constant 0 : i32
    %c0_i32_1 = arith.constant 0 : i32
    return %c0_i32, %c0_i32_0 : i32, i32
  }
  func.func @transform_3(%arg0: i32) -> (i32, i32, i32) {
    %c0_i32 = arith.constant 0 : i32
    %c0_i32_0 = arith.constant 0 : i32
    %c0_i32_1 = arith.constant 0 : i32
    return %arg0, %c0_i32, %c0_i32_0 : i32, i32, i32
  }
}

</mosaic_0001>

<bundles_post_ra>
// kernel: actor_critic_forward.1
= control target key start
LH: loop header
LB: loop body
LE: loop exit
PB: predicated region body
PF: predicated region fallthrough
CT: control target
= control target key end

     0   :  { %v692_v0 = vmov 2   ;;  %v693_v1 = vmov 1   ;;  %v694_v5 = vmov 3   ;;  %v695_v9 = vmov 0   ;;  %s986_s0 = inlined_call_operand.vmem [shape: f32[128,4], index: 0, kind: input, shape index: {}]   ;;  %s987_s1 = inlined_call_operand.vmem [shape: f32[5,128], index: 1, kind: input, shape index: {}]   ;;  %s988_s2 = inlined_call_operand.vmem [shape: f32[8,128], index: 2, kind: input, shape index: {}]   ;;  %s989_s3 = inlined_call_operand.vmem [shape: f32[1,8,128], index: 3, kind: output, shape index: {}]  }
   0x1   :  { %649 = vset.pattern.permute.xlu0 %v692_v0  ;;  %648 = vset.pattern.permute.xlu1 %v693_v1  ;;  %v23_v2 = vld [vmem:[%s986_s0] sm:$0xff]  ;;  %v26_v3 = vld [vmem:[%s986_s0 + $0x18] sm:$0xff]  ;;  %v24_v4 = vld [vmem:[%s986_s0 + $0x8] sm:$0xff]  ;;  %v696_v14 = vmov 0.0|0.0   ;;  %v16_v33 = vlaneseq  ;;  %vm697_vm0 = vmmov 0  }
   0x2   :  { %256 = vperm.xlu0 %649, %v23_v2   ;;  %156 = vperm.xlu1 %648, %v23_v2   ;;  %v27_v6 = vld [vmem:[%s986_s0 + $0x20] sm:$0xff]  ;;  %v30_v7 = vld [vmem:[%s986_s0 + $0x38] sm:$0xff]  ;;  %v25_v8 = vld [vmem:[%s986_s0 + $0x10] sm:$0xff] }
   0x3   :  { %v28_v10 = vld [vmem:[%s986_s0 + $0x28] sm:$0xff]  ;;  %v751_v11 = vld [vmem:[%s986_s0 + $0x40] sm:$0xff]  ;;  %v757_v12 = vld [vmem:[%s986_s0 + $0x58] sm:$0xff]  ;;  %617 = vmatprep.subr.bf16.mxu0 %v696_v14  ;;  %v838_v36 = vshrl.u32 %v16_v33, 7 }
   0x4   :  { %v33_v13 = vld [vmem:[%s986_s0 + $0x50] sm:$0xff]  ;;  %v773_v15 = vld [vmem:[%s986_s0 + $0x68] sm:$0xff]  ;;  %v787_v18 = vld [vmem:[%s986_s0 + $0x60] sm:$0xff] }
   0x5   :  { %v29_v16 = vld [vmem:[%s986_s0 + $0x30] sm:$0xff]  ;;  %v32_v17 = vld [vmem:[%s986_s0 + $0x48] sm:$0xff]  ;;  %v806_v20 = vld [vmem:[%s986_s0 + $0x78] sm:$0xff]  ;;  %v221_v39 = vsub.s32 1, %v838_v36  ;;  %v121_v40 = vsub.s32 0, %v838_v36  ;;  %v321_v43 = vsub.s32 2, %v838_v36 }
   0x6   :  { %268 = vperm.xlu0 %649, %v26_v3   ;;  %160 = vperm.xlu1 %648, %v24_v4   ;;  %v798_v19 = vld [vmem:[%s986_s0 + $0x70] sm:$0xff]  ;;  %v14_v42 = vld [vmem:[%s987_s1] sm:$0x1f]  ;;  %v21_v44 = vsub.s32 4, %v838_v36  ;;  %v421_v50 = vsub.s32 3, %v838_v36  ;;  %vm18_vm1 = vcmp.eq.s32.totalorder %v838_v36, 0 }
   0x7   :  { %v853_v45 = vrot.slane %v14_v42, %v221_v39  ;;  %v855_v46 = vrot.slane %v14_v42, %v121_v40  ;;  %v859_v49 = vrot.slane %v14_v42, %v321_v43 }
   0x8   :  { %v862_v51 = vrot.slane %v14_v42, %v21_v44  ;;  %v869_v58 = vrot.slane %v14_v42, %v421_v50 }
   0xa   :  { %655 = vset.pattern.permute.xlu0 %v694_v5  ;;  %650 = vset.pattern.permute.xlu1 %v692_v0 }
   0xb   :  { %360 = vperm.xlu0 %655, %v24_v4   ;;  %260 = vperm.xlu1 %650, %v24_v4  }
   0xf   :  { %372 = vperm.xlu0 %655, %v27_v6   ;;  %651 = vset.pattern.permute.xlu1 %v694_v5 }
  0x10   :  { %356 = vperm.xlu1 %651, %v23_v2  }
  0x13   :  { %384 = vperm.xlu0 %655, %v30_v7  }
  0x14   :  { %652 = vset.pattern.permute.xlu1 %v695_v9 }
  0x15   :  { %51 = vperm.xlu1 %652, %v25_v8  }
  0x17   :  { %665 = vset.pattern.permute.xlu0 %v693_v1 }
  0x18   :  { %164 = vperm.xlu0 %665, %v25_v8  }
  0x19   :  { %56 = vperm.xlu1 %652, %v26_v3  }
  0x1c   :  { %176 = vperm.xlu0 %665, %v28_v10  }
  0x1d   :  { %653 = vset.pattern.permute.xlu1 %v693_v1 }
  0x1e   :  { %168 = vperm.xlu1 %653, %v26_v3  }
  0x20   :  { %188 = vperm.xlu0 %665, %v751_v11  }
  0x22   :  { %654 = vset.pattern.permute.xlu1 %v692_v0 }
  0x23   :  { %264 = vperm.xlu1 %654, %v25_v8  }
  0x24   :  { %200 = vperm.xlu0 %665, %v757_v12  }
  0x27   :  { %656 = vset.pattern.permute.xlu1 %v694_v5 }
  0x28   :  { %672 = vset.pattern.permute.xlu0 %v695_v9  ;;  %364 = vperm.xlu1 %656, %v25_v8  }
  0x29   :  { %41 = vperm.xlu0 %672, %v23_v2  }
  0x2c   :  { %368 = vperm.xlu1 %656, %v26_v3  }
  0x2d   :  { %46 = vperm.xlu0 %672, %v24_v4  }
  0x30   :  { %657 = vset.pattern.permute.xlu1 %v695_v9 }
  0x31   :  { %66 = vperm.xlu1 %657, %v28_v10   ;;  %61 = vperm.xlu0 %672, %v27_v6  }
  0x35   :  { %658 = vset.pattern.permute.xlu1 %v693_v1  ;;  %76 = vperm.xlu0 %672, %v30_v7  }
  0x36   :  { %172 = vperm.xlu1 %658, %v27_v6  }
  0x39   :  { %91 = vperm.xlu0 %672, %v33_v13  }
  0x3a   :  { %659 = vset.pattern.permute.xlu1 %v692_v0 }
  0x3b   :  { %272 = vperm.xlu1 %659, %v27_v6  }
  0x3d   :  { %106 = vperm.xlu0 %672, %v773_v15  }
  0x3f   :  { %276 = vperm.xlu1 %659, %v28_v10  }
  0x41   :  { %676 = vset.pattern.permute.xlu0 %v692_v0 }
  0x42   :  { %280 = vperm.xlu0 %676, %v29_v16  }
  0x43   :  { %660 = vset.pattern.permute.xlu1 %v694_v5 }
  0x44   :  { %376 = vperm.xlu1 %660, %v28_v10  }
  0x46   :  { %292 = vperm.xlu0 %676, %v32_v17  }
  0x48   :  { %661 = vset.pattern.permute.xlu1 %v695_v9 }
  0x49   :  { %71 = vperm.xlu1 %661, %v29_v16  }
  0x4a   :  { %304 = vperm.xlu0 %676, %v787_v18  }
  0x4d   :  { %662 = vset.pattern.permute.xlu1 %v693_v1 }
  0x4e   :  { %180 = vperm.xlu1 %662, %v29_v16   ;;  %678 = vset.pattern.permute.xlu0 %v694_v5 }
  0x4f   :  { %396 = vperm.xlu0 %678, %v33_v13  }
  0x52   :  { %184 = vperm.xlu1 %662, %v30_v7  }
  0x53   :  { %408 = vperm.xlu0 %678, %v773_v15  }
  0x56   :  { %663 = vset.pattern.permute.xlu1 %v692_v0 }
  0x57   :  { %284 = vperm.xlu1 %663, %v30_v7   ;;  %682 = vset.pattern.permute.xlu0 %v693_v1 }
  0x58   :  { %212 = vperm.xlu0 %682, %v798_v19  }
  0x5b   :  { %664 = vset.pattern.permute.xlu1 %v694_v5 }
  0x5c   :  { %380 = vperm.xlu1 %664, %v29_v16   ;;  %685 = vset.pattern.permute.xlu0 %v692_v0 }
  0x5d   :  { %316 = vperm.xlu0 %685, %v806_v20  }
  0x60   :  { %666 = vset.pattern.permute.xlu1 %v695_v9 }
  0x61   :  { %81 = vperm.xlu1 %666, %v751_v11   ;;  %687 = vset.pattern.permute.xlu0 %v694_v5 }
  0x65   :  { %86 = vperm.xlu1 %666, %v32_v17  }
  0x69   :  { %667 = vset.pattern.permute.xlu1 %v693_v1 }
  0x6a   :  { %192 = vperm.xlu1 %667, %v32_v17  }
  0x6e   :  { %668 = vset.pattern.permute.xlu1 %v692_v0 }
  0x6f   :  { %288 = vperm.xlu1 %668, %v751_v11  }
  0x73   :  { %669 = vset.pattern.permute.xlu1 %v694_v5 }
  0x74   :  { %388 = vperm.xlu1 %669, %v751_v11  }
  0x78   :  { %392 = vperm.xlu1 %669, %v32_v17  }
  0x7c   :  { %670 = vset.pattern.permute.xlu1 %v695_v9 }
  0x7d   :  { %96 = vperm.xlu1 %670, %v757_v12  }
  0x81   :  { %671 = vset.pattern.permute.xlu1 %v693_v1  ;;  %v157_v21 = vpop.permute.xlu1 %156  ;;  %v257_v22 = vpop.permute.xlu0 %256 }
  0x82   :  { %196 = vperm.xlu1 %671, %v33_v13   ;;  %v223_v53 = vmul.f32 %v853_v45, %v157_v21  ;;  %v323_v54 = vmul.f32 %v859_v49, %v257_v22 }
  0x85   :  { %v161_v23 = vpop.permute.xlu1 %160  ;;  %v821_v24 = vpop.permute.xlu0 %268 }
  0x86   :  { %673 = vset.pattern.permute.xlu1 %v692_v0  ;;  %v224_v63 = vmul.f32 %v853_v45, %v161_v23 }
  0x87   :  { %296 = vperm.xlu1 %673, %v33_v13  }
  0x8a   :  { %v261_v25 = vpop.permute.xlu1 %260  ;;  %v361_v26 = vpop.permute.xlu0 %360 }
  0x8b   :  { %300 = vperm.xlu1 %673, %v757_v12   ;;  %v324_v6 = vmul.f32 %v859_v49, %v261_v25  ;;  %v424_v8 = vmul.f32 %v869_v58, %v361_v26 }
  0x8e   :  { %v825_v27 = vpop.permute.xlu0 %372 }
  0x8f   :  { %674 = vset.pattern.permute.xlu1 %v694_v5  ;;  %v357_v28 = vpop.permute.xlu1 %356 }
  0x90   :  { %400 = vperm.xlu1 %674, %v757_v12  }
  0x92   :  { %v829_v29 = vpop.permute.xlu0 %384 }
  0x94   :  { %675 = vset.pattern.permute.xlu1 %v695_v9  ;;  %v52_v30 = vpop.permute.xlu1 %51 }
  0x95   :  { %101 = vperm.xlu1 %675, %v787_v18   ;;  %v125_v62 = vmul.f32 %v855_v46, %v52_v30 }
  0x97   :  { %v165_v31 = vpop.permute.xlu0 %164  ;;  %v141_v12 = vadd.f32 %v125_v62, %v862_v51 }
  0x98   :  { %v57_v32 = vpop.permute.xlu1 %56  ;;  %v225_v13 = vmul.f32 %v853_v45, %v165_v31 }
  0x99   :  { %677 = vset.pattern.permute.xlu1 %v693_v1  ;;  %v126_v59 = vmul.f32 %v855_v46, %v57_v32 }
  0x9a   :  { %204 = vperm.xlu1 %677, %v787_v18  }
  0x9b   :  { %v835_v34 = vpop.permute.xlu0 %176  ;;  %v142_v10 = vadd.f32 %v126_v59, %v862_v51 }
  0x9c   :  { %v228_v50 = vmul.f32 %v853_v45, %v835_v34 }
  0x9d   :  { %v169_v35 = vpop.permute.xlu1 %168 }
  0x9e   :  { %208 = vperm.xlu1 %677, %v773_v15   ;;  %v226_v2 = vmul.f32 %v853_v45, %v169_v35 }
  0x9f   :  { %v840_v37 = vpop.permute.xlu0 %188 }
  0xa0   :  { %v242_v16 = vadd.f32 %v226_v2, %v142_v10 }
  0xa2   :  { %679 = vset.pattern.permute.xlu1 %v692_v0  ;;  %v265_v38 = vpop.permute.xlu1 %264 }
  0xa3   :  { %308 = vperm.xlu1 %679, %v773_v15   ;;  %v846_v41 = vpop.permute.xlu0 %200  ;;  %v326_v15 = vmul.f32 %v859_v49, %v821_v24  ;;  %v325_v22 = vmul.f32 %v859_v49, %v265_v38 }
  0xa5   :  { %v342_v24 = vadd.f32 %v326_v15, %v242_v16 }
  0xa7   :  { %680 = vset.pattern.permute.xlu1 %v694_v5  ;;  %v365_v47 = vpop.permute.xlu1 %364 }
  0xa8   :  { %v42_v48 = vpop.permute.xlu0 %41  ;;  %404 = vperm.xlu1 %680, %v787_v18   ;;  %v425_v31 = vmul.f32 %v869_v58, %v365_v47 }
  0xa9   :  { %v123_v52 = vmul.f32 %v855_v46, %v42_v48 }
  0xab   :  { %v139_v55 = vadd.f32 %v123_v52, %v862_v51  ;;  %v369_v56 = vpop.permute.xlu1 %368 }
  0xac   :  { %v47_v57 = vpop.permute.xlu0 %46  ;;  %681 = vset.pattern.permute.xlu1 %v695_v9  ;;  %v423_v9 = vmul.f32 %v869_v58, %v357_v28  ;;  %v426_v23 = vmul.f32 %v869_v58, %v369_v56  ;;  %v241_v28 = vadd.f32 %v225_v13, %v141_v12 }
  0xad   :  { %v239_v60 = vadd.f32 %v223_v53, %v139_v55  ;;  %v124_v61 = vmul.f32 %v855_v46, %v47_v57  ;;  %111 = vperm.xlu1 %681, %v798_v19  }
  0xae   :  { %v341_v35 = vadd.f32 %v325_v22, %v241_v28  ;;  %v442_v39 = vadd.f32 %v426_v23, %v342_v24  ;;  %v430_v23 = vmul.f32 %v869_v58, %v829_v29 }
  0xaf   :  { %v140_v3 = vadd.f32 %v124_v61, %v862_v51  ;;  %v339_v4 = vadd.f32 %v323_v54, %v239_v60 }
  0xb0   :  { %v67_v7 = vpop.permute.xlu1 %66  ;;  %v62_v17 = vpop.permute.xlu0 %61  ;;  %v441_v44 = vadd.f32 %v425_v31, %v341_v35  ;;  %v458_v48 = vmax.f32 %v442_v39, 0.0 }
  0xb1   :  { %v240_v11 = vadd.f32 %v224_v63, %v140_v3  ;;  %116 = vperm.xlu1 %681, %v806_v20   ;;  %v439_v21 = vadd.f32 %v423_v9, %v339_v4  ;;  %v127_v30 = vmul.f32 %v855_v46, %v62_v17  ;;  %v128_v38 = vmul.f32 %v855_v46, %v67_v7 }
  0xb2   :  { %v457_v55 = vmax.f32 %v441_v44, 0.0 }
  0xb3   :  { %v340_v18 = vadd.f32 %v324_v6, %v240_v11  ;;  %v455_v32 = vmax.f32 %v439_v21, 0.0  ;;  %v143_v42 = vadd.f32 %v127_v30, %v862_v51  ;;  %v144_v52 = vadd.f32 %v128_v38, %v862_v51 }
  0xb4   :  { %v621_v59 = vpack.c.bf16 %v458_v48, %v457_v55  ;;  %v77_v61 = vpop.permute.xlu0 %76 }
  0xb5   :  { %683 = vset.pattern.permute.xlu1 %v693_v1  ;;  %v173_v25 = vpop.permute.xlu1 %172  ;;  %v440_v26 = vadd.f32 %v424_v8, %v340_v18  ;;  %v244_v60 = vadd.f32 %v228_v50, %v144_v52  ;;  %v698_v8 = vmov 0.0   ;;  %v130_v9 = vmul.f32 %v855_v46, %v77_v61 }
  0xb6   :  { %216 = vperm.xlu1 %683, %v806_v20   ;;  %v227_v1 = vmul.f32 %v853_v45, %v173_v25  ;;  %614 = vmatprep.mubr.msk.f32.mxu0 %vm697_vm0, %v698_v8 }
  0xb7   :  { %v456_v33 = vmax.f32 %v440_v26, 0.0  ;;  %v146_v12 = vadd.f32 %v130_v9, %v862_v51 }
  0xb8   :  { %v243_v53 = vadd.f32 %v227_v1, %v143_v42  ;;  %v911_v6 = vpop.permute.xlu0 %91 }
  0xb9   :  { %v618_v40 = vpack.c.bf16 %v456_v33, %v455_v32 }
  0xba   :  { %684 = vset.pattern.permute.xlu1 %v692_v0  ;;  %v273_v43 = vpop.permute.xlu1 %272  ;;  %v427_v0 = vmul.f32 %v869_v58, %v825_v27 }
  0xbb   :  { %312 = vperm.xlu1 %684, %v798_v19   ;;  %619 = vmatpush3.bf16.xpose.msra.mxu0 %v618_v40  ;;  %v327_v47 = vmul.f32 %v859_v49, %v273_v43 }
  0xbc   :  { %620 = vmatprep.subr.bf16.mxu0 %v696_v14  ;;  %v915_v10 = vpop.permute.xlu0 %106 }
  0xbd   :  { %v343_v56 = vadd.f32 %v327_v47, %v243_v53  ;;  %v231_v47 = vmul.f32 %v853_v45, %v840_v37 }
  0xbe   :  { %v277_v54 = vpop.permute.xlu1 %276 }
  0xbf   :  { %686 = vset.pattern.permute.xlu1 %v694_v5  ;;  %v328_v57 = vmul.f32 %v859_v49, %v277_v54  ;;  %v443_v62 = vadd.f32 %v427_v0, %v343_v56 }
  0xc0   :  { %412 = vperm.xlu1 %686, %v798_v19  }
  0xc1   :  { %v344_v63 = vadd.f32 %v328_v57, %v244_v60  ;;  %v459_v27 = vmax.f32 %v443_v62, 0.0  ;;  %v281_v16 = vpop.permute.xlu0 %280 }
  0xc2   :  { %v329_v26 = vmul.f32 %v859_v49, %v281_v16 }
  0xc3   :  { %622 = vmatpush3.bf16.xpose.msra.mxu0 %v621_v59  ;;  %v377_v34 = vpop.permute.xlu1 %376 }
  0xc4   :  { %v428_v2 = vmul.f32 %v869_v58, %v377_v34  ;;  %416 = vperm.xlu1 %686, %v806_v20   ;;  %623 = vmatprep.subr.bf16.mxu0 %v696_v14 }
  0xc5   :  { %v293_v52 = vpop.permute.xlu0 %292 }
  0xc6   :  { %v444_v5 = vadd.f32 %v428_v2, %v344_v63  ;;  %v332_v56 = vmul.f32 %v859_v49, %v293_v52 }
  0xc8   :  { %v460_v3 = vmax.f32 %v444_v5, 0.0  ;;  %v72_v4 = vpop.permute.xlu1 %71 }
  0xc9   :  { %v129_v11 = vmul.f32 %v855_v46, %v72_v4 }
  0xca   :  { %v624_v19 = vpack.c.bf16 %v460_v3, %v459_v27 }
  0xcb   :  { %v145_v17 = vadd.f32 %v129_v11, %v862_v51 }
  0xcc   :  { %625 = vmatpush3.bf16.xpose.msra.mxu0 %v624_v19  ;;  %v133_v19 = vmul.f32 %v855_v46, %v911_v6 }
  0xcd   :  { %v181_v7 = vpop.permute.xlu1 %180  ;;  %626 = vmatprep.subr.bf16.mxu0 %v696_v14 }
  0xce   :  { %v229_v15 = vmul.f32 %v853_v45, %v181_v7  ;;  %v305_v7 = vpop.permute.xlu0 %304  ;;  %v149_v8 = vadd.f32 %v133_v19, %v862_v51 }
  0xcf   :  { %v335_v52 = vmul.f32 %v859_v49, %v305_v7 }
  0xd0   :  { %v245_v25 = vadd.f32 %v229_v15, %v145_v17 }
  0xd1   :  { %v185_v20 = vpop.permute.xlu1 %184 }
  0xd2   :  { %v230_v13 = vmul.f32 %v853_v45, %v185_v20  ;;  %v345_v31 = vadd.f32 %v329_v26, %v245_v25 }
  0xd4   :  { %v246_v21 = vadd.f32 %v230_v13, %v146_v12  ;;  %v397_v13 = vpop.permute.xlu0 %396 }
  0xd5   :  { %v433_v6 = vmul.f32 %v869_v58, %v397_v13 }
  0xd6   :  { %v285_v18 = vpop.permute.xlu1 %284 }
  0xd7   :  { %v330_v22 = vmul.f32 %v859_v49, %v285_v18  ;;  %v234_v18 = vmul.f32 %v853_v45, %v846_v41  ;;  %v136_v41 = vmul.f32 %v855_v46, %v915_v10 }
  0xd9   :  { %v346_v28 = vadd.f32 %v330_v22, %v246_v21 }
  0xdb   :  { %v381_v30 = vpop.permute.xlu1 %380  ;;  %v446_v24 = vadd.f32 %v430_v23, %v346_v28 }
  0xdc   :  { %v429_v32 = vmul.f32 %v869_v58, %v381_v30 }
  0xdd   :  { %v462_v35 = vmax.f32 %v446_v24, 0.0 }
  0xde   :  { %v445_v33 = vadd.f32 %v429_v32, %v345_v31 }
  0xe0   :  { %v461_v39 = vmax.f32 %v445_v33, 0.0  ;;  %v82_v40 = vpop.permute.xlu1 %81 }
  0xe1   :  { %v131_v29 = vmul.f32 %v855_v46, %v82_v40 }
  0xe2   :  { %v627_v38 = vpack.c.bf16 %v462_v35, %v461_v39 }
  0xe3   :  { %v147_v48 = vadd.f32 %v131_v29, %v862_v51  ;;  %v152_v29 = vadd.f32 %v136_v41, %v862_v51 }
  0xe4   :  { %628 = vmatpush3.bf16.xpose.msra.mxu0 %v627_v38  ;;  %v87_v42 = vpop.permute.xlu1 %86 }
  0xe5   :  { %629 = vmatprep.subr.bf16.mxu0 %v696_v14  ;;  %v132_v43 = vmul.f32 %v855_v46, %v87_v42  ;;  %v247_v57 = vadd.f32 %v231_v47, %v147_v48 }
  0xe7   :  { %v148_v53 = vadd.f32 %v132_v43, %v862_v51  ;;  %v409_v43 = vpop.permute.xlu0 %408 }
  0xe8   :  { %v436_v10 = vmul.f32 %v869_v58, %v409_v43 }
  0xe9   :  { %v193_v1 = vpop.permute.xlu1 %192 }
  0xea   :  { %v232_v50 = vmul.f32 %v853_v45, %v193_v1 }
  0xec   :  { %v248_v0 = vadd.f32 %v232_v50, %v148_v53 }
  0xee   :  { %v289_v44 = vpop.permute.xlu1 %288  ;;  %v348_v34 = vadd.f32 %v332_v56, %v248_v0 }
  0xef   :  { %v331_v54 = vmul.f32 %v859_v49, %v289_v44 }
  0xf1   :  { %v347_v60 = vadd.f32 %v331_v54, %v247_v57 }
  0xf3   :  { %v389_v55 = vpop.permute.xlu1 %388 }
  0xf4   :  { %v431_v59 = vmul.f32 %v869_v58, %v389_v55 }
  0xf6   :  { %v447_v37 = vadd.f32 %v431_v59, %v347_v60 }
  0xf7   :  { %v393_v61 = vpop.permute.xlu1 %392 }
  0xf8   :  { %v432_v62 = vmul.f32 %v869_v58, %v393_v61  ;;  %v463_v2 = vmax.f32 %v447_v37, 0.0 }
  0xfa   :  { %v448_v63 = vadd.f32 %v432_v62, %v348_v34 }
  0xfc   :  { %v464_v5 = vmax.f32 %v448_v63, 0.0  ;;  %v97_v27 = vpop.permute.xlu1 %96 }
  0xfd   :  { %v134_v9 = vmul.f32 %v855_v46, %v97_v27 }
  0xfe   :  { %v630_v3 = vpack.c.bf16 %v464_v5, %v463_v2  ;;  %v213_v5 = vpop.permute.xlu0 %212 }
  0xff   :  { %v150_v15 = vadd.f32 %v134_v9, %v862_v51  ;;  %v237_v19 = vmul.f32 %v853_v45, %v213_v5 }
 0x100   :  { %631 = vmatpush3.bf16.xpose.msra.mxu0 %v630_v3 }
 0x101   :  { %v197_v4 = vpop.permute.xlu1 %196  ;;  %632 = vmatprep.subr.bf16.mxu0 %v696_v14  ;;  %v250_v23 = vadd.f32 %v234_v18, %v150_v15 }
 0x102   :  { %v233_v20 = vmul.f32 %v853_v45, %v197_v4 }
 0x104   :  { %v249_v16 = vadd.f32 %v233_v20, %v149_v8  ;;  %v317_v8 = vpop.permute.xlu0 %316 }
 0x105   :  { %v338_v13 = vmul.f32 %v859_v49, %v317_v8 }
 0x106   :  { %v297_v11 = vpop.permute.xlu1 %296 }
 0x107   :  { %v333_v12 = vmul.f32 %v859_v49, %v297_v11 }
 0x109   :  { %v349_v21 = vadd.f32 %v333_v12, %v249_v16 }
 0x10a   :  { %v301_v17 = vpop.permute.xlu1 %300 }
 0x10b   :  { %v334_v22 = vmul.f32 %v859_v49, %v301_v17  ;;  %v449_v26 = vadd.f32 %v433_v6, %v349_v21 }
 0x10d   :  { %v350_v28 = vadd.f32 %v334_v22, %v250_v23  ;;  %v465_v24 = vmax.f32 %v449_v26, 0.0 }
 0x10f   :  { %v401_v25 = vpop.permute.xlu1 %400 }
 0x110   :  { %v434_v30 = vmul.f32 %v869_v58, %v401_v25 }
 0x112   :  { %v450_v31 = vadd.f32 %v434_v30, %v350_v28 }
 0x114   :  { %v466_v32 = vmax.f32 %v450_v31, 0.0  ;;  %v102_v33 = vpop.permute.xlu1 %101 }
 0x115   :  { %v135_v38 = vmul.f32 %v855_v46, %v102_v33 }
 0x116   :  { %v633_v35 = vpack.c.bf16 %v466_v32, %v465_v24 }
 0x117   :  { %v151_v44 = vadd.f32 %v135_v38, %v862_v51 }
 0x118   :  { %634 = vmatpush3.bf16.xpose.msra.mxu0 %v633_v35 }
 0x119   :  { %v205_v39 = vpop.permute.xlu1 %204  ;;  %635 = vmatprep.subr.bf16.mxu0 %v696_v14 }
 0x11a   :  { %v235_v1 = vmul.f32 %v853_v45, %v205_v39 }
 0x11c   :  { %v251_v53 = vadd.f32 %v235_v1, %v151_v44 }
 0x11d   :  { %v209_v40 = vpop.permute.xlu1 %208 }
 0x11e   :  { %v236_v42 = vmul.f32 %v853_v45, %v209_v40  ;;  %v351_v56 = vadd.f32 %v335_v52, %v251_v53 }
 0x120   :  { %v252_v48 = vadd.f32 %v236_v42, %v152_v29 }
 0x122   :  { %v309_v47 = vpop.permute.xlu1 %308 }
 0x123   :  { %v336_v50 = vmul.f32 %v859_v49, %v309_v47 }
 0x125   :  { %v352_v54 = vadd.f32 %v336_v50, %v252_v48 }
 0x127   :  { %v405_v55 = vpop.permute.xlu1 %404  ;;  %v452_v0 = vadd.f32 %v436_v10, %v352_v54 }
 0x128   :  { %v435_v57 = vmul.f32 %v869_v58, %v405_v55 }
 0x129   :  { %v468_v60 = vmax.f32 %v452_v0, 0.0 }
 0x12a   :  { %v451_v59 = vadd.f32 %v435_v57, %v351_v56 }
 0x12c   :  { %v467_v61 = vmax.f32 %v451_v59, 0.0  ;;  %v112_v34 = vpop.permute.xlu1 %111 }
 0x12d   :  { %v137_v2 = vmul.f32 %v855_v46, %v112_v34 }
 0x12e   :  { %v636_v37 = vpack.c.bf16 %v468_v60, %v467_v61 }
 0x12f   :  { %v153_v4 = vadd.f32 %v137_v2, %v862_v51 }
 0x130   :  { %637 = vmatpush3.bf16.xpose.msra.mxu0 %v636_v37  ;;  %v117_v62 = vpop.permute.xlu1 %116 }
 0x131   :  { %638 = vmatprep.subr.bf16.mxu0 %v696_v14  ;;  %v138_v27 = vmul.f32 %v855_v46, %v117_v62  ;;  %v253_v14 = vadd.f32 %v237_v19, %v153_v4 }
 0x133   :  { %v154_v9 = vadd.f32 %v138_v27, %v862_v51  ;;  %v15_v51 = vld [vmem:[%s988_s2] sm:$0xff] }
 0x135   :  { %v217_v63 = vpop.permute.xlu1 %216 }
 0x136   :  { %v238_v7 = vmul.f32 %v853_v45, %v217_v63 }
 0x138   :  { %v254_v12 = vadd.f32 %v238_v7, %v154_v9 }
 0x13a   :  { %v313_v3 = vpop.permute.xlu1 %312  ;;  %v354_v17 = vadd.f32 %v338_v13, %v254_v12 }
 0x13b   :  { %v337_v20 = vmul.f32 %v859_v49, %v313_v3 }
 0x13d   :  { %v353_v46 = vadd.f32 %v337_v20, %v253_v14 }
 0x13f   :  { %v413_v11 = vpop.permute.xlu1 %412 }
 0x140   :  { %v437_v15 = vmul.f32 %v869_v58, %v413_v11 }
 0x142   :  { %v453_v18 = vadd.f32 %v437_v15, %v353_v46 }
 0x143   :  { %v417_v16 = vpop.permute.xlu1 %416 }
 0x144   :  { %v438_v21 = vmul.f32 %v869_v58, %v417_v16  ;;  %v469_v45 = vmax.f32 %v453_v18, 0.0 }
 0x146   :  { %v454_v6 = vadd.f32 %v438_v21, %v354_v17 }
 0x148   :  { %v470_v22 = vmax.f32 %v454_v6, 0.0 }
 0x14a   :  { %v639_v23 = vpack.c.bf16 %v470_v22, %v469_v45 }
 0x14c   :  { %640 = vmatpush3.bf16.xpose.msra.mxu0 %v639_v23 }
 0x153   :  { %615 = vmatmul.mubr.f32.vlgmr.msra.gmra.mrb[0].mxu0 %v15_v51 }
 0x226   :  { %v537_v49 = vpop.f32.mrb[0].mxu0 }
 0x227   :  { %v541_v25 = vsel %vm18_vm1, -1e+30, %v537_v49  ;;  %v616_v26 = vpop.f32.mrb[1].mxu0 }
 0x228   :  { %v542_v28 = vrot.slane %v541_v25, 4 }
 0x22a   :  { %v543_v30 = vmax.f32 %v541_v25, %v542_v28 }
 0x22c   :  { %v544_v58 = vrot.slane %v543_v30, 2 }
 0x22e   :  { %v545_v31 = vmax.f32 %v543_v30, %v544_v58 }
 0x230   :  { %v546_v24 = vrot.slane %v545_v31, 1 }
 0x232   :  { %v547_v32 = vmax.f32 %v545_v31, %v546_v24 }
 0x234   :  { %v548_v33 = vsub.f32 %v541_v25, %v547_v32 }
 0x236   :  { %v549_v35 = vmul.f32 1.442695, %v548_v33 }
 0x238   :  { %688 = vpow2.f32 %v549_v35 }
 0x242   :  { %v689_v39 = vpop.eup %688 }
 0x243   :  { %v551_v41 = vrot.slane %v689_v39, 4 }
 0x245   :  { %v552_v40 = vadd.f32 %v689_v39, %v551_v41 }
 0x247   :  { %v553_v38 = vrot.slane %v552_v40, 2 }
 0x249   :  { %v554_v42 = vadd.f32 %v553_v38, %v552_v40 }
 0x24b   :  { %v555_v1 = vrot.slane %v554_v42, 1 }
 0x24d   :  { %v556_v29 = vadd.f32 %v555_v1, %v554_v42 }
 0x24f   :  { %690 = vrcp.f32 %v556_v29 }
 0x259   :  { %v691_v43 = vpop.eup %690 }
 0x25a   :  { %v558_v44 = vmul.f32 %v691_v43, %v689_v39 }
 0x25c   :  { %v559_v47 = vsel %vm18_vm1, %v537_v49, %v558_v44 }
 0x25d   :  { %560 = vst [vmem:[%s989_s3] sm:$0xff] %v559_v47 }

</bundles_post_ra>
